<compile_context>
chip_gen: v6e
topology: v6e:2x2x1
jax: 0.10.0
libtpu: 0.0.40
codegen_flags: <defaults>
</compile_context>

<pallas_src>
import jax
import jax.numpy as jnp
from jax.experimental import pallas as pl
from jax.experimental.pallas import tpu as pltpu

F_REF = 720.0  # reference focal length for the calibration scale


# -----------------------------------------------------------------------------
# Fused kernel: one grid step == one batch element.
# -----------------------------------------------------------------------------
def _hapon_fused_kernel(scale_ref, img_ref, wf_ref, bf_ref,
                        wvh_ref, btd_ref, wtdv_ref, wtdh_ref,
                        wcls_ref, bcls_ref, out_ref):
    img = img_ref[...]                                     # (Cin, H*W) f32
    cin = img.shape[0]

    # ---- frontend: 1x1 conv (Cin -> Cf) + ReLU, as Cin VPU broadcast-FMAs ----
    feat = bf_ref[...]                                     # (Cf, 1) bias, f32
    for i in range(cin):                                   # static, unrolled (Cin=3)
        feat = feat + wf_ref[i] * img[i:i + 1, :]          # (Cf,1)*(1,HW) -> (Cf,HW)
    feat = jnp.maximum(feat, 0.0)                          # (Cf, H*W) f32

    # ---- per-batch calibration scale, shared by both transformers ------------
    sfeat = (feat * scale_ref[...]).astype(jnp.bfloat16)   # (Cf, H*W) bf16 -> MXU

    # ---- v + h transformers fused into one lane-dense MXU matmul -------------
    bev = jnp.dot(sfeat, wvh_ref[...],
                  preferred_element_type=jnp.float32)      # (Cf, 2*Z*X) f32
    zx = bev.shape[1] // 2
    v_bev = bev[:, :zx].astype(jnp.bfloat16)               # lane-tile aligned slice
    h_bev = bev[:, zx:].astype(jnp.bfloat16)

    # ---- topdown: 1x1 conv over cat([v, h], C) + ReLU -------------------------
    # channel concat == sum of two half-weight matmuls; all biases (b_v, b_h,
    # b_td) are pre-folded into btd_ref (Ctd, Z*X) on the wrapper side.
    td = (jnp.dot(wtdv_ref[...], v_bev, preferred_element_type=jnp.float32)
          + jnp.dot(wtdh_ref[...], h_bev, preferred_element_type=jnp.float32)
          + btd_ref[...])
    td = jnp.maximum(td, 0.0)                              # (Ctd, Z*X) f32

    # ---- classifier: 1x1 conv -> logits ---------------------------------------
    logits = jnp.dot(wcls_ref[...], td.astype(jnp.bfloat16),
                     preferred_element_type=jnp.float32) + bcls_ref[...]
    out_ref[...] = logits.astype(out_ref.dtype)            # (ncls, Z*X) lane-dense


# -----------------------------------------------------------------------------
# Wrapper: weight re-packing (weights only, data-independent) + one pallas_call.
# -----------------------------------------------------------------------------
def horizontally_aware_pon_forward(image, calib, params):
    B, Cin, H, W = image.shape
    Cf = params["w_f"].shape[1]
    Z, Hv = params["w_v"].shape
    X, Ww = params["w_h"].shape
    Ctd = params["w_td"].shape[1]
    ncls = params["w_cls"].shape[1]
    assert Hv == H and Ww == W, "transformer weights must match feature-map size"
    # synthetic transformers carry image width -> BEV X and image height -> BEV Z
    assert Z == H and X == W, "requires Z == H and X == W for the channel concat"
    assert params["w_td"].shape[0] == 2 * Cf

    HW, ZX = H * W, Z * X
    f32, bf16 = jnp.float32, jnp.bfloat16

    # per-batch focal-length normalisation scalar (tiny wrapper-side gather)
    scale = (calib[:, 0, 0] / F_REF).astype(f32).reshape(B, 1, 1)

    # ---- weight re-packing ----------------------------------------------------
    wf = params["w_f"].astype(f32)[:, :, None]                      # (Cin, Cf, 1)
    bf = params["b_f"].astype(f32).reshape(Cf, 1)

    # Dense axis-collapses as Kronecker-structured (H*W, Z*X) matrices,
    # lane-concatenated into one (H*W, 2*Z*X) MXU RHS:
    #   v: out[c, z*X+x] = sum_h Wv[z,h] * feat[c, h*W+x]   -> kron(Wv, I_W)^T
    #   h: out[c, z*X+x] = sum_w Wh[x,w] * feat[c, z*W+w]   -> kron(I_H, Wh)^T
    wvbt = jnp.kron(params["w_v"].astype(f32), jnp.eye(W, dtype=f32)).T
    whbt = jnp.kron(jnp.eye(H, dtype=f32), params["w_h"].astype(f32)).T
    w_vh = jnp.concatenate([wvbt, whbt], axis=1).astype(bf16)       # (HW, 2*ZX)

    wtdv = params["w_td"][:Cf, :].T.astype(bf16)                    # (Ctd, Cf)
    wtdh = params["w_td"][Cf:, :].T.astype(bf16)                    # (Ctd, Cf)

    # Fold positional v/h biases + topdown bias into one (Ctd, ZX) f32 bias:
    #   sum_c w_td[c,k]*b_v[z] + sum_c w_td[Cf+c,k]*b_h[x] + b_td[k]
    bvb_pos = jnp.repeat(params["b_v"].astype(f32), X).reshape(1, ZX)   # per-z
    bhb_pos = jnp.tile(params["b_h"].astype(f32), Z).reshape(1, ZX)     # per-x
    rsum_v = params["w_td"][:Cf, :].astype(f32).sum(axis=0)[:, None]    # (Ctd,1)
    rsum_h = params["w_td"][Cf:, :].astype(f32).sum(axis=0)[:, None]    # (Ctd,1)
    btd_full = (rsum_v * bvb_pos + rsum_h * bhb_pos
                + params["b_td"].astype(f32)[:, None])               # (Ctd, ZX)

    wcls = params["w_cls"].T.astype(bf16)                            # (ncls, Ctd)
    bcls = params["b_cls"].astype(f32).reshape(ncls, 1)

    img2 = image.astype(f32).reshape(B, Cin, HW)                     # free reshape

    def resident2(shape):
        return pl.BlockSpec(shape, lambda b: (0, 0))

    def resident3(shape):
        return pl.BlockSpec(shape, lambda b: (0, 0, 0))

    out = pl.pallas_call(
        _hapon_fused_kernel,
        out_shape=jax.ShapeDtypeStruct((B, ncls, ZX), jnp.float32),
        grid=(B,),
        in_specs=[
            pl.BlockSpec((None, 1, 1), lambda b: (b, 0, 0)),        # calib scale
            pl.BlockSpec((None, Cin, HW), lambda b: (b, 0, 0)),     # image block
            resident3((Cin, Cf, 1)),                                # frontend W
            resident2((Cf, 1)),                                     # frontend b
            resident2((HW, 2 * ZX)),                                # fused v|h kron W
            resident2((Ctd, ZX)),                                   # folded topdown b
            resident2((Ctd, Cf)),                                   # topdown W (v half)
            resident2((Ctd, Cf)),                                   # topdown W (h half)
            resident2((ncls, Ctd)),                                 # classifier W
            resident2((ncls, 1)),                                   # classifier b
        ],
        out_specs=pl.BlockSpec((None, ncls, ZX), lambda b: (b, 0, 0)),
        compiler_params=pltpu.CompilerParams(
            dimension_semantics=("parallel",)),      # batch axis over both TCs
    )(scale, img2, wf, bf, w_vh, btd_full, wtdv, wtdh, wcls, bcls)

    return out.reshape(B, ncls, Z, X)                               # free reshape


# -----------------------------------------------------------------------------
# Pure-JAX f32 reference (same synthetic submodule semantics).
# -----------------------------------------------------------------------------
def _reference_forward(image, calib, p):
    scale = (calib[:, 0, 0] / F_REF).astype(jnp.float32)
    feat = jax.nn.relu(jnp.einsum('bihw,ic->bchw', image, p["w_f"])
                       + p["b_f"][None, :, None, None])
    sf = feat * scale[:, None, None, None]
    v = jnp.einsum('zh,bchx->bczx', p["w_v"], sf) + p["b_v"][None, None, :, None]
    h = jnp.einsum('xw,bczw->bczx', p["w_h"], sf) + p["b_h"][None, None, None, :]
    bev = jnp.concatenate([v, h], axis=1)
    td = jax.nn.relu(jnp.einsum('bczx,ck->bkzx', bev, p["w_td"])
                     + p["b_td"][None, :, None, None])
    return (jnp.einsum('bkzx,kn->bnzx', td, p["w_cls"])
            + p["b_cls"][None, :, None, None])


# -----------------------------------------------------------------------------
# Deterministic parameter construction (non-zero biases exercise the folding).
# -----------------------------------------------------------------------------
def make_params(key, *, c_in=3, c_feat=8, H=16, W=16, Z=16, X=16, c_td=16, n_cls=4):
    ks = jax.random.split(key, 10)
    return {
        "w_f":   0.1 * jax.random.normal(ks[0], (c_in, c_feat), jnp.float32),
        "b_f":   0.05 * jax.random.normal(ks[5], (c_feat,), jnp.float32),
        "w_v":   0.1 * jax.random.normal(ks[1], (Z, H), jnp.float32),
        "b_v":   0.05 * jax.random.normal(ks[6], (Z,), jnp.float32),
        "w_h":   0.1 * jax.random.normal(ks[2], (X, W), jnp.float32),
        "b_h":   0.05 * jax.random.normal(ks[7], (X,), jnp.float32),
        "w_td":  0.1 * jax.random.normal(ks[3], (2 * c_feat, c_td), jnp.float32),
        "b_td":  0.05 * jax.random.normal(ks[8], (c_td,), jnp.float32),
        "w_cls": 0.1 * jax.random.normal(ks[4], (c_td, n_cls), jnp.float32),
        "b_cls": 0.05 * jax.random.normal(ks[9], (n_cls,), jnp.float32),
    }


if __name__ == "__main__":
    key = jax.random.PRNGKey(0)
    k_img, k_par = jax.random.split(key)

    B, H, W = 2, 16, 16
    Z, X, C_FEAT, C_TD, N_CLS = 16, 16, 8, 16, 4

    image = jax.random.normal(k_img, (B, 3, H, W), jnp.float32)     # NCHW, like torch
    calib = jnp.stack(
        [jnp.array([[720.0 + 10.0 * b, 0.0, W / 2.0],
                    [0.0, 720.0 + 10.0 * b, H / 2.0],
                    [0.0, 0.0, 1.0]], jnp.float32) for b in range(B)],
        axis=0,
    )                                                                # (B, 3, 3)

    params = make_params(k_par, c_in=3, c_feat=C_FEAT, H=H, W=W, Z=Z, X=X,
                         c_td=C_TD, n_cls=N_CLS)

    logits = jax.jit(horizontally_aware_pon_forward)(image, calib, params)
    logits = jax.block_until_ready(logits)
    assert logits.shape == (B, N_CLS, Z, X), logits.shape

    # correctness vs pure-f32 reference (bf16 MXU operands -> loose tolerance)
    ref = _reference_forward(image, calib, params)
    max_err = float(jnp.max(jnp.abs(logits - ref)))
    assert max_err < 5e-2, f"max abs err vs reference: {max_err}"

    print("KERNEL_OK")
</pallas_src>

<mosaic_0001>
module attributes {stable_mosaic.version = 11 : i64} {
  func.func @_hapon_fused_kernel(%arg0: i32, %arg1: memref<1x1x1xf32, #tpu.memory_space<vmem>>, %arg2: memref<1x3x256xf32, #tpu.memory_space<vmem>>, %arg3: memref<3x8x1xf32, #tpu.memory_space<vmem>>, %arg4: memref<8x1xf32, #tpu.memory_space<vmem>>, %arg5: memref<256x512xbf16, #tpu.memory_space<vmem>>, %arg6: memref<16x256xf32, #tpu.memory_space<vmem>>, %arg7: memref<16x8xbf16, #tpu.memory_space<vmem>>, %arg8: memref<16x8xbf16, #tpu.memory_space<vmem>>, %arg9: memref<4x16xbf16, #tpu.memory_space<vmem>>, %arg10: memref<4x1xf32, #tpu.memory_space<vmem>>, %arg11: memref<1x4x256xf32, #tpu.memory_space<vmem>>) attributes {dimension_semantics = [#tpu.dimension_semantics<parallel>], iteration_bounds = array<i64: 2>, scalar_prefetch = 0 : i64, scratch_operands = 0 : i64, tpu.core_type = #tpu.core_type<tc>, window_params = [{transform_indices = @transform_0, window_bounds = array<i64: 1, 1, 1>}, {transform_indices = @transform_1, window_bounds = array<i64: 1, 3, 256>}, {pipeline_mode = #tpu.pipeline_mode<synchronous>, transform_indices = @transform_2, window_bounds = array<i64: 3, 8, 1>}, {pipeline_mode = #tpu.pipeline_mode<synchronous>, transform_indices = @transform_3, window_bounds = array<i64: 8, 1>}, {pipeline_mode = #tpu.pipeline_mode<synchronous>, transform_indices = @transform_4, window_bounds = array<i64: 256, 512>}, {pipeline_mode = #tpu.pipeline_mode<synchronous>, transform_indices = @transform_5, window_bounds = array<i64: 16, 256>}, {pipeline_mode = #tpu.pipeline_mode<synchronous>, transform_indices = @transform_6, window_bounds = array<i64: 16, 8>}, {pipeline_mode = #tpu.pipeline_mode<synchronous>, transform_indices = @transform_7, window_bounds = array<i64: 16, 8>}, {pipeline_mode = #tpu.pipeline_mode<synchronous>, transform_indices = @transform_8, window_bounds = array<i64: 4, 16>}, {pipeline_mode = #tpu.pipeline_mode<synchronous>, transform_indices = @transform_9, window_bounds = array<i64: 4, 1>}, {transform_indices = @transform_10, window_bounds = array<i64: 1, 4, 256>}]} {
    %c0 = arith.constant 0 : index
    %c0_0 = arith.constant 0 : index
    %c0_1 = arith.constant 0 : index
    %0 = vector.load %arg2[%c0, %c0_0, %c0_1] : memref<1x3x256xf32, #tpu.memory_space<vmem>>, vector<1x3x256xf32>
    %1 = vector.shape_cast %0 : vector<1x3x256xf32> to vector<3x256xf32>
    %c0_2 = arith.constant 0 : index
    %c0_3 = arith.constant 0 : index
    %2 = vector.load %arg4[%c0_2, %c0_3] : memref<8x1xf32, #tpu.memory_space<vmem>>, vector<8x1xf32>
    %c0_4 = arith.constant 0 : index
    %c0_5 = arith.constant 0 : index
    %c0_6 = arith.constant 0 : index
    %3 = vector.load %arg3[%c0_4, %c0_5, %c0_6] : memref<3x8x1xf32, #tpu.memory_space<vmem>>, vector<1x8x1xf32>
    %4 = vector.shape_cast %3 : vector<1x8x1xf32> to vector<8x1xf32>
    %5 = vector.extract_strided_slice %1 {offsets = [0, 0], sizes = [1, 256], strides = [1, 1]} : vector<3x256xf32> to vector<1x256xf32>
    %6 = vector.broadcast %4 : vector<8x1xf32> to vector<8x256xf32>
    %7 = vector.broadcast %5 : vector<1x256xf32> to vector<8x256xf32>
    %8 = arith.mulf %6, %7 : vector<8x256xf32>
    %9 = vector.broadcast %2 : vector<8x1xf32> to vector<8x256xf32>
    %10 = arith.addf %9, %8 : vector<8x256xf32>
    %c1 = arith.constant 1 : index
    %c0_7 = arith.constant 0 : index
    %c0_8 = arith.constant 0 : index
    %11 = vector.load %arg3[%c1, %c0_7, %c0_8] : memref<3x8x1xf32, #tpu.memory_space<vmem>>, vector<1x8x1xf32>
    %12 = vector.shape_cast %11 : vector<1x8x1xf32> to vector<8x1xf32>
    %13 = vector.extract_strided_slice %1 {offsets = [1, 0], sizes = [1, 256], strides = [1, 1]} : vector<3x256xf32> to vector<1x256xf32>
    %14 = vector.broadcast %12 : vector<8x1xf32> to vector<8x256xf32>
    %15 = vector.broadcast %13 : vector<1x256xf32> to vector<8x256xf32>
    %16 = arith.mulf %14, %15 : vector<8x256xf32>
    %17 = arith.addf %10, %16 : vector<8x256xf32>
    %c2 = arith.constant 2 : index
    %c0_9 = arith.constant 0 : index
    %c0_10 = arith.constant 0 : index
    %18 = vector.load %arg3[%c2, %c0_9, %c0_10] : memref<3x8x1xf32, #tpu.memory_space<vmem>>, vector<1x8x1xf32>
    %19 = vector.shape_cast %18 : vector<1x8x1xf32> to vector<8x1xf32>
    %20 = vector.extract_strided_slice %1 {offsets = [2, 0], sizes = [1, 256], strides = [1, 1]} : vector<3x256xf32> to vector<1x256xf32>
    %21 = vector.broadcast %19 : vector<8x1xf32> to vector<8x256xf32>
    %22 = vector.broadcast %20 : vector<1x256xf32> to vector<8x256xf32>
    %23 = arith.mulf %21, %22 : vector<8x256xf32>
    %24 = arith.addf %17, %23 : vector<8x256xf32>
    %cst = arith.constant 0.000000e+00 : f32
    %25 = vector.broadcast %cst : f32 to vector<8x256xf32>
    %26 = arith.maximumf %24, %25 : vector<8x256xf32>
    %c0_11 = arith.constant 0 : index
    %c0_12 = arith.constant 0 : index
    %c0_13 = arith.constant 0 : index
    %27 = vector.load %arg1[%c0_11, %c0_12, %c0_13] : memref<1x1x1xf32, #tpu.memory_space<vmem>>, vector<1x1x1xf32>
    %28 = vector.shape_cast %27 : vector<1x1x1xf32> to vector<1x1xf32>
    %29 = vector.broadcast %28 : vector<1x1xf32> to vector<8x256xf32>
    %30 = arith.mulf %26, %29 : vector<8x256xf32>
    %31 = arith.truncf %30 : vector<8x256xf32> to vector<8x256xbf16>
    %c0_14 = arith.constant 0 : index
    %c0_15 = arith.constant 0 : index
    %32 = vector.load %arg5[%c0_14, %c0_15] : memref<256x512xbf16, #tpu.memory_space<vmem>>, vector<256x512xbf16>
    %cst_16 = arith.constant dense<0.000000e+00> : vector<8x512xf32>
    %33 = tpu.matmul %31, %32, %cst_16 {dimension_numbers = #tpu.dot_dimension_numbers<[1], [0], [0], [1], [0, 0, 1, 1], [], []>} : vector<8x256xbf16>, vector<256x512xbf16>, vector<8x512xf32> -> vector<8x512xf32>
    %34 = vector.extract_strided_slice %33 {offsets = [0, 0], sizes = [8, 256], strides = [1, 1]} : vector<8x512xf32> to vector<8x256xf32>
    %35 = arith.truncf %34 : vector<8x256xf32> to vector<8x256xbf16>
    %36 = vector.extract_strided_slice %33 {offsets = [0, 256], sizes = [8, 256], strides = [1, 1]} : vector<8x512xf32> to vector<8x256xf32>
    %37 = arith.truncf %36 : vector<8x256xf32> to vector<8x256xbf16>
    %c0_17 = arith.constant 0 : index
    %c0_18 = arith.constant 0 : index
    %38 = vector.load %arg7[%c0_17, %c0_18] : memref<16x8xbf16, #tpu.memory_space<vmem>>, vector<16x8xbf16>
    %cst_19 = arith.constant dense<0.000000e+00> : vector<16x256xf32>
    %39 = tpu.matmul %38, %35, %cst_19 {dimension_numbers = #tpu.dot_dimension_numbers<[1], [0], [0], [1], [0, 0, 1, 1], [], []>} : vector<16x8xbf16>, vector<8x256xbf16>, vector<16x256xf32> -> vector<16x256xf32>
    %c0_20 = arith.constant 0 : index
    %c0_21 = arith.constant 0 : index
    %40 = vector.load %arg8[%c0_20, %c0_21] : memref<16x8xbf16, #tpu.memory_space<vmem>>, vector<16x8xbf16>
    %cst_22 = arith.constant dense<0.000000e+00> : vector<16x256xf32>
    %41 = tpu.matmul %40, %37, %cst_22 {dimension_numbers = #tpu.dot_dimension_numbers<[1], [0], [0], [1], [0, 0, 1, 1], [], []>} : vector<16x8xbf16>, vector<8x256xbf16>, vector<16x256xf32> -> vector<16x256xf32>
    %42 = arith.addf %39, %41 : vector<16x256xf32>
    %c0_23 = arith.constant 0 : index
    %c0_24 = arith.constant 0 : index
    %43 = vector.load %arg6[%c0_23, %c0_24] : memref<16x256xf32, #tpu.memory_space<vmem>>, vector<16x256xf32>
    %44 = arith.addf %42, %43 : vector<16x256xf32>
    %cst_25 = arith.constant 0.000000e+00 : f32
    %45 = vector.broadcast %cst_25 : f32 to vector<16x256xf32>
    %46 = arith.maximumf %44, %45 : vector<16x256xf32>
    %c0_26 = arith.constant 0 : index
    %c0_27 = arith.constant 0 : index
    %47 = vector.load %arg9[%c0_26, %c0_27] : memref<4x16xbf16, #tpu.memory_space<vmem>>, vector<4x16xbf16>
    %48 = arith.truncf %46 : vector<16x256xf32> to vector<16x256xbf16>
    %cst_28 = arith.constant dense<0.000000e+00> : vector<4x256xf32>
    %49 = tpu.matmul %47, %48, %cst_28 {dimension_numbers = #tpu.dot_dimension_numbers<[1], [0], [0], [1], [0, 0, 1, 1], [], []>} : vector<4x16xbf16>, vector<16x256xbf16>, vector<4x256xf32> -> vector<4x256xf32>
    %c0_29 = arith.constant 0 : index
    %c0_30 = arith.constant 0 : index
    %50 = vector.load %arg10[%c0_29, %c0_30] : memref<4x1xf32, #tpu.memory_space<vmem>>, vector<4x1xf32>
    %51 = vector.broadcast %50 : vector<4x1xf32> to vector<4x256xf32>
    %52 = arith.addf %49, %51 : vector<4x256xf32>
    %c0_31 = arith.constant 0 : index
    %c0_32 = arith.constant 0 : index
    %c0_33 = arith.constant 0 : index
    %53 = vector.load %arg11[%c0_31, %c0_32, %c0_33] : memref<1x4x256xf32, #tpu.memory_space<vmem>>, vector<1x4x256xf32>
    %54 = vector.shape_cast %53 : vector<1x4x256xf32> to vector<4x256xf32>
    %55 = vector.shape_cast %52 : vector<4x256xf32> to vector<1x4x256xf32>
    tpu.vector_store %arg11[%c0_31, %c0_32, %c0_33], %55 {strides = array<i32>} : memref<1x4x256xf32, #tpu.memory_space<vmem>>, vector<1x4x256xf32>,
    return
  }
  func.func @transform_0(%arg0: i32) -> (i32, i32, i32) {
    %c0_i32 = arith.constant 0 : i32
    %c0_i32_0 = arith.constant 0 : i32
    %c0_i32_1 = arith.constant 0 : i32
    return %arg0, %c0_i32, %c0_i32_0 : i32, i32, i32
  }
  func.func @transform_1(%arg0: i32) -> (i32, i32, i32) {
    %c0_i32 = arith.constant 0 : i32
    %c0_i32_0 = arith.constant 0 : i32
    %c0_i32_1 = arith.constant 0 : i32
    return %arg0, %c0_i32, %c0_i32_0 : i32, i32, i32
  }
  func.func @transform_2(%arg0: i32) -> (i32, i32, i32) {
    %c0_i32 = arith.constant 0 : i32
    %c0_i32_0 = arith.constant 0 : i32
    %c0_i32_1 = arith.constant 0 : i32
    %c0_i32_2 = arith.constant 0 : i32
    return %c0_i32, %c0_i32_0, %c0_i32_1 : i32, i32, i32
  }
  func.func @transform_3(%arg0: i32) -> (i32, i32) {
    %c0_i32 = arith.constant 0 : i32
    %c0_i32_0 = arith.constant 0 : i32
    %c0_i32_1 = arith.constant 0 : i32
    return %c0_i32, %c0_i32_0 : i32, i32
  }
  func.func @transform_4(%arg0: i32) -> (i32, i32) {
    %c0_i32 = arith.constant 0 : i32
    %c0_i32_0 = arith.constant 0 : i32
    %c0_i32_1 = arith.constant 0 : i32
    return %c0_i32, %c0_i32_0 : i32, i32
  }
  func.func @transform_5(%arg0: i32) -> (i32, i32) {
    %c0_i32 = arith.constant 0 : i32
    %c0_i32_0 = arith.constant 0 : i32
    %c0_i32_1 = arith.constant 0 : i32
    return %c0_i32, %c0_i32_0 : i32, i32
  }
  func.func @transform_6(%arg0: i32) -> (i32, i32) {
    %c0_i32 = arith.constant 0 : i32
    %c0_i32_0 = arith.constant 0 : i32
    %c0_i32_1 = arith.constant 0 : i32
    return %c0_i32, %c0_i32_0 : i32, i32
  }
  func.func @transform_7(%arg0: i32) -> (i32, i32) {
    %c0_i32 = arith.constant 0 : i32
    %c0_i32_0 = arith.constant 0 : i32
    %c0_i32_1 = arith.constant 0 : i32
    return %c0_i32, %c0_i32_0 : i32, i32
  }
  func.func @transform_8(%arg0: i32) -> (i32, i32) {
    %c0_i32 = arith.constant 0 : i32
    %c0_i32_0 = arith.constant 0 : i32
    %c0_i32_1 = arith.constant 0 : i32
    return %c0_i32, %c0_i32_0 : i32, i32
  }
  func.func @transform_9(%arg0: i32) -> (i32, i32) {
    %c0_i32 = arith.constant 0 : i32
    %c0_i32_0 = arith.constant 0 : i32
    %c0_i32_1 = arith.constant 0 : i32
    return %c0_i32, %c0_i32_0 : i32, i32
  }
  func.func @transform_10(%arg0: i32) -> (i32, i32, i32) {
    %c0_i32 = arith.constant 0 : i32
    %c0_i32_0 = arith.constant 0 : i32
    %c0_i32_1 = arith.constant 0 : i32
    return %arg0, %c0_i32, %c0_i32_0 : i32, i32, i32
  }
}

</mosaic_0001>

<bundles_post_ra>
// kernel: mul.32
= control target key start
LH: loop header
LB: loop body
LE: loop exit
PB: predicated region body
PF: predicated region fallthrough
CT: control target
= control target key end

     0   :  { %s7_s6 = smov 3  ;;  %s21_s9 = smov 3  ;;  %vm4_vm0 = vcmask 130048   ;;  %vm11_vm1 = vcmask 1048448   ;;  %vm18_vm2 = vcmask 917248   ;;  %vm25_vm3 = vcmask 786048   ;;  %s121_s0 = inlined_call_operand.vmem [shape: f32[16,16], index: 0, kind: input, shape index: {}]   ;;  %s122_s1 = inlined_call_operand.vmem [shape: f32[256], index: 1, kind: output, shape index: {}]  }
   0x1   :  { %v63_v0 = vld [vmem:[%s121_s0 + $0x7] ss:$8 sm:%s7_s6]   ;;  %s77_s10 = smov 112   ;;  %v65_v1 = vld [vmem:[%s121_s0 + $0x5] ss:$8 sm:%s21_s9]   ;;  %s14_s13 = smov 3 }
   0x2   :  { %9 = vrot.lane.b32.xlu0 %v63_v0, %s77_s10  ;;  %s78_s14 = smov 80   ;;  %v64_v2 = vld [vmem:[%s121_s0 + $0x6] ss:$8 sm:%s14_s13]   ;;  %s28_s17 = smov 3  ;;  %vm32_vm4 = vcmask 654848   ;;  %vm39_vm5 = vcmask 523648  }
   0x3   :  { %23 = vrot.lane.b32.xlu1 %v65_v1, %s78_s14  ;;  %v66_v3 = vld [vmem:[%s121_s0 + $0x4] ss:$8 sm:%s28_s17]   ;;  %s35_s20 = smov 3  ;;  %s42_s21 = smov 3  ;;  %vm46_vm6 = vcmask 392448   ;;  %vm53_vm7 = vcmask 261248  }
   0x4   :  { %s79_s22 = smov 96   ;;  %s80_s23 = smov 64   ;;  %v67_v4 = vld [vmem:[%s121_s0 + $0x3] ss:$8 sm:%s35_s20]   ;;  %v68_v5 = vld [vmem:[%s121_s0 + $0x2] ss:$8 sm:%s42_s21]  }
   0x5   :  { %s2_s26 = smov 3  ;;  %s49_s29 = smov 3 }
   0x6   :  { %16 = vrot.lane.b32.xlu0 %v64_v2, %s79_s22  ;;  %v3_v6 = vld [vmem:[%s121_s0] ss:$8 sm:%s2_s26]   ;;  %s81_s3 = smov 48   ;;  %s82_s4 = smov 32  }
   0x7   :  { %30 = vrot.lane.b32.xlu1 %v66_v3, %s80_s23  ;;  %5 = vst.msk [vmem:[#allocation0] sm:$0x3] %vm4_vm0, %v3_v6   ;;  %v69_v7 = vld [vmem:[%s121_s0 + $0x1] ss:$8 sm:%s49_s29]   ;;  %s83_s0 = smov 16  }
   0xa   :  { %37 = vrot.lane.b32.xlu0 %v67_v4, %s81_s3 }
   0xb   :  { %44 = vrot.lane.b32.xlu1 %v68_v5, %s82_s4 }
   0xe   :  { %51 = vrot.lane.b32.xlu0 %v69_v7, %s83_s0 }
  0x74   :  { %v10_v8 = vpop.permute.xlu0 %9  }
  0x75   :  { %12 = vst.msk [vmem:[#allocation0] sm:$0x3] %vm11_vm1, %v10_v8   ;;  %v24_v9 = vpop.permute.xlu1 %23  }
  0x78   :  { %v17_v10 = vpop.permute.xlu0 %16  }
  0x79   :  { %19 = vst.msk [vmem:[#allocation0] sm:$0x3] %vm18_vm2, %v17_v10   ;;  %v31_v11 = vpop.permute.xlu1 %30  }
  0x7a   :  { %26 = vst.msk [vmem:[#allocation0] sm:$0x3] %vm25_vm3, %v24_v9  }
  0x7b   :  { %33 = vst.msk [vmem:[#allocation0] sm:$0x3] %vm32_vm4, %v31_v11  }
  0x7c   :  { %v38_v12 = vpop.permute.xlu0 %37  }
  0x7d   :  { %40 = vst.msk [vmem:[#allocation0] sm:$0x3] %vm39_vm5, %v38_v12   ;;  %v45_v13 = vpop.permute.xlu1 %44  }
  0x7e   :  { %47 = vst.msk [vmem:[#allocation0] sm:$0x3] %vm46_vm6, %v45_v13  }
  0x80   :  { %v52_v14 = vpop.permute.xlu0 %51  }
  0x81   :  { %54 = vst.msk [vmem:[#allocation0] sm:$0x3] %vm53_vm7, %v52_v14  }
  0x88   :  { %v59_v15 = vld [vmem:[#allocation0] sm:$0x3] }
  0x89   :  { %62 = vst [vmem:[%s122_s1] sm:$0x3] %v59_v15 }

// kernel: tile.8
= control target key start
LH: loop header
LB: loop body
LE: loop exit
PB: predicated region body
PF: predicated region fallthrough
CT: control target
= control target key end

     0   :  { %s28_s0 = inlined_call_operand.vmem [shape: f32[16], index: 0, kind: input, shape index: {}]   ;;  %s29_s1 = inlined_call_operand.vmem [shape: f32[16,16], index: 1, kind: output, shape index: {}]  }
   0x1   :  { %v4_v0 = vld [vmem:[%s28_s0] ss:$0 sm:$0xff] }
   0x2   :  { %5 = vst [vmem:[%s29_s1] sm:$0xff] %v4_v0  ;;  %8 = vst [vmem:[%s29_s1 + $0x8] sm:$0xff] %v4_v0 }

// kernel: horizontally_aware_pon_forward.1
= control target key start
LH: loop header
LB: loop body
LE: loop exit
PB: predicated region body
PF: predicated region fallthrough
CT: control target
= control target key end

     0   :  { %s1470_s13 = smov 0   ;;  %s1731_s0 = inlined_call_operand.vmem [shape: f32[2,1,1], index: 0, kind: input, shape index: {}]   ;;  %s1732_s1 = inlined_call_operand.vmem [shape: f32[2,3,256], index: 1, kind: input, shape index: {}]   ;;  %s1733_s2 = inlined_call_operand.vmem [shape: f32[3,8,1], index: 2, kind: input, shape index: {}]   ;;  %s1734_s3 = inlined_call_operand.vmem [shape: f32[8,1], index: 3, kind: input, shape index: {}]   ;;  %s1735_s4 = inlined_call_operand.vmem [shape: bf16[256,512], index: 4, kind: input, shape index: {}]   ;;  %s1736_s5 = inlined_call_operand.vmem [shape: f32[16,256], index: 5, kind: input, shape index: {}]   ;;  %s1737_s6 = inlined_call_operand.vmem [shape: bf16[16,8], index: 6, kind: input, shape index: {}]   ;;  %s1738_s7 = inlined_call_operand.vmem [shape: bf16[16,8], index: 7, kind: input, shape index: {}]   ;;  %s1739_s8 = inlined_call_operand.vmem [shape: bf16[4,16], index: 8, kind: input, shape index: {}]   ;;  %s1740_s9 = inlined_call_operand.vmem [shape: f32[4,1], index: 9, kind: input, shape index: {}]   ;;  %s1741_s10 = inlined_call_operand.vmem [shape: f32[2,4,256], index: 10, kind: output, shape index: {}]  }
   0x1 LB: > { %s1210_s14 = sadd.s32 4294967295, %s1412_s13   ;;  %p1214_p0 = scmp.ge.s32.totalorder %s1412_s13, 1  ;;  %s1412_s13 = sphi %s1470_s13, %s20_s13  }
   0x2   : > { %p320_p1 = scmp.lt.s32.totalorder %s1412_s13, 3 }
   0x4   : > { %p321_p2 = pnand %p1214_p0, %p320_p1 }
   0x5   : > { %p361_p3 = scmp.lt.s32.totalorder (!%p321_p2), %s1210_s14, 1 }
   0x6   : > { %324 = sbr.rel (%p321_p2) target bundleno = 766 (0x2fe), region = 60 }
   0xb   : > { %v1219_v0 = vld [vmem:[%s1733_s2 + $0x8] sm:$0xff]  ;;  %v377_v1 = vld [vmem:[%s1733_s2] sm:$0xff]  ;;  %v1414_v2 = vmov 0   ;;  %v1220_v3 = vld [vmem:[%s1733_s2 + $0x10] sm:$0xff]  ;;  %s1743_s14 = smov (!%p361_p3, %s1210_s14), 1  ;;  %vm968_vm0 = vcmask 1043456  }
   0xc   : > { %1307 = vset.pattern.permute.xlu1 %v1414_v2  ;;  %1306 = vset.pattern.permute.xlu0 %v1414_v2  ;;  %v376_v4 = vld [vmem:[%s1734_s3] sm:$0xff]  ;;  %v1310_v6 = vld [vmem:[%s1735_s4 + $0xec] ss:$16 sps:$4 sm:$0xff]   ;;  %s363_s11 = scalar_lea.vmem %s1731_s0, %s1743_s14  ;;  %v1313_v8 = vld [vmem:[%s1735_s4 + $0xe8] ss:$16 sps:$4 sm:$0xff]   ;;  %s1295_s30 = sshll.u32 %s1743_s14, 3 }
   0xd   : > { %415 = vperm.xlu1 %1307, %v1219_v0   ;;  %380 = vperm.xlu0 %1306, %v377_v1   ;;  %v1308_v5 = vld [vmem:[%s1735_s4 + $0xe4] ss:$16 sps:$4 sm:$0xff]   ;;  %v1312_v7 = vld [vmem:[%s1735_s4 + $0xe0] ss:$16 sps:$4 sm:$0xff]   ;;  %v1316_v12 = vld [vmem:[%s1735_s4 + $0xcc] ss:$16 sps:$4 sm:$0xff]   ;;  %s368_s15 = scalar_lea.vmem %s1732_s1, %s1295_s30 }
   0xe   : > { %869 = vmatprep.subr.bf16.mxu0 %v1308_v5  ;;  %v1090_v9 = vld [vmem:[%s1740_s9] sm:$0xf]  ;;  %910 = vmatprep.subr.bf16.mxu1 %v1310_v6  ;;  %v1314_v10 = vld [vmem:[%s1735_s4 + $0xc4] ss:$16 sps:$4 sm:$0xff]   ;;  %v1319_v14 = vld [vmem:[%s1735_s4 + $0xc8] ss:$16 sps:$4 sm:$0xff]  }
   0xf   : > { %870 = vmatpush1.bf16.msra.mxu0 %v1312_v7  ;;  %v1221_v11 = vld [vmem:[%s363_s11] ss:$0 sm:$0xff]  ;;  %911 = vmatpush1.bf16.msra.mxu1 %v1313_v8  ;;  %v1320_v15 = vld [vmem:[%s1735_s4 + $0xa4] ss:$16 sps:$4 sm:$0xff]   ;;  %v1322_v16 = vld [vmem:[%s1735_s4 + $0xac] ss:$16 sps:$4 sm:$0xff]   ;;  %v384_v8 = vlaneseq }
  0x10   : > { %871 = vmatprep.subr.bf16.mxu0 %v1314_v10  ;;  %v1318_v13 = vld [vmem:[%s1735_s4 + $0xc0] ss:$16 sps:$4 sm:$0xff]   ;;  %912 = vmatprep.subr.bf16.mxu1 %v1316_v12  ;;  %v1325_v18 = vld [vmem:[%s1735_s4 + $0xa8] ss:$16 sps:$4 sm:$0xff]   ;;  %v1326_v19 = vld [vmem:[%s1735_s4 + $0x84] ss:$16 sps:$4 sm:$0xff]  }
  0x11   : > { %444 = vperm.xlu1 %1307, %v1220_v3   ;;  %406 = vperm.xlu0 %1306, %v376_v4   ;;  %v1324_v17 = vld [vmem:[%s1735_s4 + $0xa0] ss:$16 sps:$4 sm:$0xff]   ;;  %v1328_v20 = vld [vmem:[%s1735_s4 + $0x8c] ss:$16 sps:$4 sm:$0xff]   ;;  %v1332_v22 = vld [vmem:[%s1735_s4 + $0x64] ss:$16 sps:$4 sm:$0xff]  }
  0x12   : > { %v1330_v21 = vld [vmem:[%s1735_s4 + $0x80] ss:$16 sps:$4 sm:$0xff]   ;;  %v1331_v23 = vld [vmem:[%s1735_s4 + $0x88] ss:$16 sps:$4 sm:$0xff]   ;;  %v1334_v24 = vld [vmem:[%s1735_s4 + $0x6c] ss:$16 sps:$4 sm:$0xff]  }
  0x13   : > { %872 = vmatpush1.bf16.msra.mxu0 %v1318_v13  ;;  %913 = vmatpush1.bf16.msra.mxu1 %v1319_v14  ;;  %v1336_v25 = vld [vmem:[%s1735_s4 + $0x60] ss:$16 sps:$4 sm:$0xff]   ;;  %v1338_v26 = vld [vmem:[%s1735_s4 + $0x44] ss:$16 sps:$4 sm:$0xff]   ;;  %v1337_v27 = vld [vmem:[%s1735_s4 + $0x68] ss:$16 sps:$4 sm:$0xff]  }
  0x14   : > { %873 = vmatprep.subr.bf16.mxu0 %v1320_v15  ;;  %914 = vmatprep.subr.bf16.mxu1 %v1322_v16  ;;  %v1340_v28 = vld [vmem:[%s1735_s4 + $0x4c] ss:$16 sps:$4 sm:$0xff]   ;;  %v1342_v29 = vld [vmem:[%s1735_s4 + $0x40] ss:$16 sps:$4 sm:$0xff]   ;;  %v1344_v30 = vld [vmem:[%s1735_s4 + $0x24] ss:$16 sps:$4 sm:$0xff]  }
  0x15   : > { %1093 = vperm.xlu1 %1307, %v1090_v9   ;;  %478 = vperm.xlu0 %1306, %v1221_v11   ;;  %v1343_v31 = vld [vmem:[%s1735_s4 + $0x48] ss:$16 sps:$4 sm:$0xff]   ;;  %v1346_v32 = vld [vmem:[%s1735_s4 + $0x2c] ss:$16 sps:$4 sm:$0xff]   ;;  %v1348_v33 = vld [vmem:[%s1735_s4 + $0x20] ss:$16 sps:$4 sm:$0xff]  }
  0x16   : > { %v1350_v34 = vld [vmem:[%s1735_s4 + $0x4] ss:$16 sps:$4 sm:$0xff]   ;;  %v1349_v35 = vld [vmem:[%s1735_s4 + $0x28] ss:$16 sps:$4 sm:$0xff]   ;;  %v1352_v36 = vld [vmem:[%s1735_s4 + $0xc] ss:$16 sps:$4 sm:$0xff]  }
  0x17   : > { %874 = vmatpush1.bf16.msra.mxu0 %v1324_v17  ;;  %915 = vmatpush1.bf16.msra.mxu1 %v1325_v18  ;;  %v1354_v37 = vld [vmem:[%s1735_s4] ss:$16 sps:$4 sm:$0xff]   ;;  %v1356_v38 = vld [vmem:[%s1735_s4 + $0x1e4] ss:$16 sps:$4 sm:$0xff]   ;;  %v1355_v39 = vld [vmem:[%s1735_s4 + $0x8] ss:$16 sps:$4 sm:$0xff]  }
  0x18   : > { %875 = vmatprep.subr.bf16.mxu0 %v1326_v19  ;;  %916 = vmatprep.subr.bf16.mxu1 %v1328_v20  ;;  %v1358_v40 = vld [vmem:[%s1735_s4 + $0x1ec] ss:$16 sps:$4 sm:$0xff]   ;;  %v1360_v41 = vld [vmem:[%s1735_s4 + $0x1e0] ss:$16 sps:$4 sm:$0xff]   ;;  %v1362_v42 = vld [vmem:[%s1735_s4 + $0x1c4] ss:$16 sps:$4 sm:$0xff]  }
  0x19   : > { %v1361_v43 = vld [vmem:[%s1735_s4 + $0x1e8] ss:$16 sps:$4 sm:$0xff]   ;;  %v1364_v44 = vld [vmem:[%s1735_s4 + $0x1cc] ss:$16 sps:$4 sm:$0xff]   ;;  %v1366_v45 = vld [vmem:[%s1735_s4 + $0x1c0] ss:$16 sps:$4 sm:$0xff]  }
  0x1a   : > { %v1368_v46 = vld [vmem:[%s1735_s4 + $0x1a4] ss:$16 sps:$4 sm:$0xff]   ;;  %v1367_v47 = vld [vmem:[%s1735_s4 + $0x1c8] ss:$16 sps:$4 sm:$0xff]   ;;  %v1370_v48 = vld [vmem:[%s1735_s4 + $0x1ac] ss:$16 sps:$4 sm:$0xff]  }
  0x1b   : > { %876 = vmatpush1.bf16.msra.mxu0 %v1330_v21  ;;  %917 = vmatpush1.bf16.msra.mxu1 %v1331_v23  ;;  %v1372_v49 = vld [vmem:[%s1735_s4 + $0x1a0] ss:$16 sps:$4 sm:$0xff]   ;;  %v1374_v50 = vld [vmem:[%s1735_s4 + $0x184] ss:$16 sps:$4 sm:$0xff]   ;;  %v1373_v51 = vld [vmem:[%s1735_s4 + $0x1a8] ss:$16 sps:$4 sm:$0xff]  }
  0x1c   : > { %877 = vmatprep.subr.bf16.mxu0 %v1332_v22  ;;  %918 = vmatprep.subr.bf16.mxu1 %v1334_v24  ;;  %v1376_v52 = vld [vmem:[%s1735_s4 + $0x18c] ss:$16 sps:$4 sm:$0xff]   ;;  %v1378_v53 = vld [vmem:[%s1735_s4 + $0x180] ss:$16 sps:$4 sm:$0xff]   ;;  %v1380_v54 = vld [vmem:[%s1735_s4 + $0x164] ss:$16 sps:$4 sm:$0xff]  }
  0x1d   : > { %v1379_v55 = vld [vmem:[%s1735_s4 + $0x188] ss:$16 sps:$4 sm:$0xff]   ;;  %v1382_v56 = vld [vmem:[%s1735_s4 + $0x16c] ss:$16 sps:$4 sm:$0xff]   ;;  %v1384_v57 = vld [vmem:[%s1735_s4 + $0x160] ss:$16 sps:$4 sm:$0xff]  }
  0x1e   : > { %v1386_v58 = vld [vmem:[%s1735_s4 + $0x144] ss:$16 sps:$4 sm:$0xff]   ;;  %v1385_v59 = vld [vmem:[%s1735_s4 + $0x168] ss:$16 sps:$4 sm:$0xff]   ;;  %v1388_v60 = vld [vmem:[%s1735_s4 + $0x14c] ss:$16 sps:$4 sm:$0xff]  }
  0x1f   : > { %878 = vmatpush1.bf16.msra.mxu0 %v1336_v25  ;;  %919 = vmatpush1.bf16.msra.mxu1 %v1337_v27  ;;  %v1390_v61 = vld [vmem:[%s1735_s4 + $0x140] ss:$16 sps:$4 sm:$0xff]   ;;  %v1392_v62 = vld [vmem:[%s1735_s4 + $0x124] ss:$16 sps:$4 sm:$0xff]   ;;  %v1391_v63 = vld [vmem:[%s1735_s4 + $0x148] ss:$16 sps:$4 sm:$0xff]  }
  0x20   : > { %879 = vmatprep.subr.bf16.mxu0 %v1338_v26  ;;  %920 = vmatprep.subr.bf16.mxu1 %v1340_v28  ;;  %v1394_v0 = vld [vmem:[%s1735_s4 + $0x12c] ss:$16 sps:$4 sm:$0xff]   ;;  %v1396_v1 = vld [vmem:[%s1735_s4 + $0x120] ss:$16 sps:$4 sm:$0xff]   ;;  %v1398_v3 = vld [vmem:[%s1735_s4 + $0x104] ss:$16 sps:$4 sm:$0xff]  }
  0x21   : > { %v1397_v4 = vld [vmem:[%s1735_s4 + $0x128] ss:$16 sps:$4 sm:$0xff]   ;;  %v1400_v5 = vld [vmem:[%s1735_s4 + $0x10c] ss:$16 sps:$4 sm:$0xff]   ;;  %v1402_v6 = vld [vmem:[%s1735_s4 + $0x100] ss:$16 sps:$4 sm:$0xff]  }
  0x22   : > { %v1403_v7 = vld [vmem:[%s1735_s4 + $0x108] ss:$16 sps:$4 sm:$0xff]   ;;  %v385_v9 = vshrl.u32 %v384_v8, 7  ;;  %v375_v12 = vld [vmem:[%s368_s15] sm:$0x77]  ;;  %vm964_vm1 = vcmask 64512   ;;  %s373_s15 = scalar_lea.vmem %s1741_s10, %s1295_s30 }
  0x23   : > { %880 = vmatpush1.bf16.msra.mxu0 %v1342_v29  ;;  %921 = vmatpush1.bf16.msra.mxu1 %v1343_v31  ;;  %vm1096_vm2 = vcmask 130048  }
  0x24   : > { %881 = vmatprep.subr.bf16.mxu0 %v1344_v30  ;;  %922 = vmatprep.subr.bf16.mxu1 %v1346_v32  ;;  %v386_v10 = vsub.s32 0, %v385_v9  ;;  %v390_v11 = vsub.s32 4, %v385_v9  ;;  %v420_v13 = vsub.s32 1, %v385_v9  ;;  %v424_v14 = vsub.s32 5, %v385_v9 }
  0x25   : > { %v449_v17 = vsub.s32 2, %v385_v9  ;;  %v453_v18 = vsub.s32 6, %v385_v9 }
  0x26   : > { %v387_v15 = vrot.slane %v375_v12, %v386_v10  ;;  %v391_v16 = vrot.slane %v375_v12, %v390_v11  ;;  %v421_v19 = vrot.slane %v375_v12, %v420_v13  ;;  %v425_v20 = vrot.slane %v375_v12, %v424_v14  ;;  %v1076_v11 = vld [vmem:[%s1736_s5 + $0x8] sm:$0xff]  ;;  %v1077_v14 = vld [vmem:[%s1736_s5 + $0x10] sm:$0xff] }
  0x27   : > { %882 = vmatpush1.bf16.msra.mxu0 %v1348_v33  ;;  %923 = vmatpush1.bf16.msra.mxu1 %v1349_v35  ;;  %v450_v23 = vrot.slane %v375_v12, %v449_v17  ;;  %v454_v24 = vrot.slane %v375_v12, %v453_v18  ;;  %v1078_v18 = vld [vmem:[%s1736_s5 + $0x18] sm:$0xff] }
  0x28   : > { %883 = vmatprep.subr.bf16.mxu0 %v1350_v34  ;;  %924 = vmatprep.subr.bf16.mxu1 %v1352_v36  ;;  %v397_v21 = vrot.slane %v387_v15, %v386_v10  ;;  %v401_v22 = vrot.slane %v391_v16, %v386_v10  ;;  %v431_v27 = vrot.slane %v421_v19, %v420_v13 }
  0x29   : > { %v435_v28 = vrot.slane %v425_v20, %v420_v13  ;;  %v460_v31 = vrot.slane %v450_v23, %v449_v17  ;;  %v464_v32 = vrot.slane %v454_v24, %v449_v17 }
  0x2b   : > { %884 = vmatpush1.bf16.msra.mxu0 %v1354_v37  ;;  %925 = vmatpush1.bf16.msra.mxu1 %v1355_v39 }
  0x2c   : > { %885 = vmatprep.subr.bf16.mxu0 %v1356_v38  ;;  %926 = vmatprep.subr.bf16.mxu1 %v1358_v40 }
  0x2f   : > { %886 = vmatpush2.bf16.msra.mxu0 %v1360_v41  ;;  %927 = vmatpush2.bf16.msra.mxu1 %v1361_v43 }
  0x30   : > { %887 = vmatprep.subr.bf16.mxu0 %v1362_v42  ;;  %928 = vmatprep.subr.bf16.mxu1 %v1364_v44 }
  0x33   : > { %888 = vmatpush2.bf16.msra.mxu0 %v1366_v45  ;;  %929 = vmatpush2.bf16.msra.mxu1 %v1367_v47 }
  0x34   : > { %889 = vmatprep.subr.bf16.mxu0 %v1368_v46  ;;  %930 = vmatprep.subr.bf16.mxu1 %v1370_v48 }
  0x37   : > { %890 = vmatpush2.bf16.msra.mxu0 %v1372_v49  ;;  %931 = vmatpush2.bf16.msra.mxu1 %v1373_v51 }
  0x38   : > { %891 = vmatprep.subr.bf16.mxu0 %v1374_v50  ;;  %932 = vmatprep.subr.bf16.mxu1 %v1376_v52 }
  0x3b   : > { %892 = vmatpush2.bf16.msra.mxu0 %v1378_v53  ;;  %933 = vmatpush2.bf16.msra.mxu1 %v1379_v55 }
  0x3c   : > { %893 = vmatprep.subr.bf16.mxu0 %v1380_v54  ;;  %934 = vmatprep.subr.bf16.mxu1 %v1382_v56 }
  0x3f   : > { %894 = vmatpush2.bf16.msra.mxu0 %v1384_v57  ;;  %935 = vmatpush2.bf16.msra.mxu1 %v1385_v59 }
  0x40   : > { %895 = vmatprep.subr.bf16.mxu0 %v1386_v58  ;;  %936 = vmatprep.subr.bf16.mxu1 %v1388_v60 }
  0x43   : > { %896 = vmatpush2.bf16.msra.mxu0 %v1390_v61  ;;  %937 = vmatpush2.bf16.msra.mxu1 %v1391_v63 }
  0x44   : > { %897 = vmatprep.subr.bf16.mxu0 %v1392_v62  ;;  %938 = vmatprep.subr.bf16.mxu1 %v1394_v0  ;;  %v1404_v0 = vld [vmem:[%s1738_s7] sm:$0xff]  }
  0x47   : > { %898 = vmatpush2.bf16.msra.mxu0 %v1396_v1  ;;  %939 = vmatpush2.bf16.msra.mxu1 %v1397_v4  ;;  %v1405_v1 = vld [vmem:[%s1737_s6] sm:$0xff]  }
  0x48   : > { %899 = vmatprep.subr.bf16.mxu0 %v1398_v3  ;;  %940 = vmatprep.subr.bf16.mxu1 %v1400_v5 }
  0x4b   : > { %900 = vmatpush2.bf16.msra.mxu0 %v1402_v6  ;;  %941 = vmatpush2.bf16.msra.mxu1 %v1403_v7 }
  0x88   : > { %v416_v25 = vpop.permute.xlu1 %415  ;;  %v381_v26 = vpop.permute.xlu0 %380 }
  0x89   : > { %v402_v29 = vmul.f32 %v397_v21, %v381_v26  ;;  %v403_v30 = vmul.f32 %v401_v22, %v381_v26  ;;  %v436_v35 = vmul.f32 %v431_v27, %v416_v25  ;;  %v437_v36 = vmul.f32 %v435_v28, %v416_v25 }
  0x8c   : > { %v445_v33 = vpop.permute.xlu1 %444  ;;  %v407_v34 = vpop.permute.xlu0 %406 }
  0x8d   : > { %v409_v37 = vadd.f32 %v407_v34, %v402_v29  ;;  %v410_v38 = vadd.f32 %v407_v34, %v403_v30  ;;  %v465_v39 = vmul.f32 %v460_v31, %v445_v33  ;;  %v466_v40 = vmul.f32 %v464_v32, %v445_v33  ;;  %v1087_v30 = vld [vmem:[%s1739_s8] sm:$0x3] }
  0x8f   : > { %v438_v41 = vadd.f32 %v436_v35, %v409_v37  ;;  %v439_v42 = vadd.f32 %v437_v36, %v410_v38 }
  0x90   : > { %v479_v47 = vpop.permute.xlu0 %478  ;;  %v1094_v32 = vpop.permute.xlu1 %1093 }
  0x91   : > { %v467_v43 = vadd.f32 %v465_v39, %v438_v41  ;;  %v468_v44 = vadd.f32 %v466_v40, %v439_v42 }
  0x93   : > { %v469_v45 = vmax.f32 %v467_v43, 0.0  ;;  %v470_v46 = vmax.f32 %v468_v44, 0.0 }
  0x95   : > { %v481_v48 = vmul.f32 %v479_v47, %v469_v45  ;;  %v482_v49 = vmul.f32 %v479_v47, %v470_v46 }
  0x97   : > { %v483_v50 = vpack.c.bf16 %v481_v48, %v481_v48  ;;  %v484_v51 = vpack.c.bf16 %v482_v49, %v482_v49 }
  0x99   : > { %901 = vmatprep.mubr.bf16.mxu0 %v484_v51  ;;  %942 = vmatprep.mubr.bf16.mxu1 %v484_v51 }
  0x9a   : > { %902 = vmatmul.mubr.bf16.vlgmr.msra.gmra.mxu0 %v483_v50  ;;  %943 = vmatmul.mubr.bf16.vlgmr.msra.gmra.mxu1 %v483_v50 }
  0x9b   : > { %1007 = vmatprep.mubr.bf16.mxu0 %v1414_v2  ;;  %1064 = vmatprep.mubr.bf16.mxu1 %v1414_v2 }
 0x15a   : > { %v903_v52 = vpop.f32.mrf.mxu0  ;;  %v944_v53 = vpop.f32.mrf.mxu1 }
 0x15b   : > { %v951_v54 = vpack.c.bf16 %v903_v52, %v903_v52  ;;  %v953_v55 = vpack.c.bf16 %v944_v53, %v944_v53 }
 0x15c   : > { %v905_v56 = vpop.f32.mrf.mxu0  ;;  %v946_v57 = vpop.f32.mrf.mxu1 }
 0x15d   : > { %v952_v58 = vpack.c.bf16 %v905_v56, %v905_v56  ;;  %v954_v59 = vpack.c.bf16 %v946_v57, %v946_v57  ;;  %v1027_v62 = vsel %vm968_vm0, %v951_v54, 0  ;;  %v970_v63 = vsel %vm968_vm0, %v953_v55, 0 }
 0x15e   : > { %v907_v60 = vpop.f32.mrf.mxu0  ;;  %v948_v61 = vpop.f32.mrf.mxu1 }
 0x15f   : > { %1287 = vmatprep.subr.msk.bf16.mxu0 %vm968_vm0, %v954_v59  ;;  %1290 = vmatprep.subr.msk.bf16.mxu1 %vm968_vm0, %v952_v58 }
 0x160   : > { %v908_v3 = vpop.f32.mrf.mxu0  ;;  %v949_v4 = vpop.f32.mrf.mxu1  ;;  %990 = vmatpush1.bf16.msra.mxu0 %v970_v63  ;;  %1047 = vmatpush1.bf16.msra.mxu1 %v1027_v62 }
 0x163   : > { %1288 = vmatmul.mubr.msk.bf16.vlgmr.msra.gmra.mxu0 %vm964_vm1, %v1404_v0  ;;  %1291 = vmatmul.mubr.msk.bf16.vlgmr.msra.gmra.mxu1 %vm964_vm1, %v1405_v1 }
 0x164   : > { %1132 = vmatprep.mubr.bf16.mxu0 %v1414_v2  ;;  %v1075_v2 = vld [vmem:[%s1736_s5] sm:$0xff] }
 0x223   : > { %v1009_v5 = vpop.f32.mrf.mxu0  ;;  %v1066_v6 = vpop.f32.mrf.mxu1 }
 0x224   : > { %v1067_v10 = vadd.f32 %v1066_v6, %v1009_v5 }
 0x225   : > { %v1011_v7 = vpop.f32.mrf.mxu0  ;;  %v1068_v8 = vpop.f32.mrf.mxu1 }
 0x226   : > { %v1069_v9 = vadd.f32 %v1068_v8, %v1011_v7  ;;  %v1079_v22 = vadd.f32 %v1075_v2, %v1067_v10 }
 0x227   : > { %v1013_v12 = vpop.f32.mrf.mxu0  ;;  %v1070_v13 = vpop.f32.mrf.mxu1 }
 0x228   : > { %v1071_v15 = vadd.f32 %v1070_v13, %v1013_v12  ;;  %v1080_v19 = vadd.f32 %v1076_v11, %v1069_v9  ;;  %v1083_v27 = vmax.f32 %v1079_v22, 0.0 }
 0x229   : > { %v1015_v16 = vpop.f32.mrf.mxu0  ;;  %v1072_v17 = vpop.f32.mrf.mxu1 }
 0x22a   : > { %v1081_v20 = vadd.f32 %v1077_v14, %v1071_v15  ;;  %v1073_v21 = vadd.f32 %v1072_v17, %v1015_v16  ;;  %v1084_v25 = vmax.f32 %v1080_v19, 0.0 }
 0x22c   : > { %v1082_v23 = vadd.f32 %v1078_v18, %v1073_v21  ;;  %v1085_v24 = vmax.f32 %v1081_v20, 0.0 }
 0x22e   : > { %v1086_v26 = vmax.f32 %v1082_v23, 0.0  ;;  %v1088_v29 = vpack.c.bf16 %v1085_v24, %v1083_v27 }
 0x230   : > { %v1089_v28 = vpack.c.bf16 %v1086_v26, %v1084_v25 }
 0x232   : > { %1114 = vmatprep.subr.bf16.mxu0 %v1089_v28 }
 0x233   : > { %1115 = vmatpush1.bf16.msra.mxu0 %v1088_v29 }
 0x236   : > { %1292 = vmatmul.mubr.msk.bf16.vlgmr.msra.gmra.mxu0 %vm1096_vm2, %v1087_v30 }
 0x2f6   : > { %v1134_v31 = vpop.f32.mrf.mxu0 }
 0x2f7   : > { %v1135_v34 = vadd.f32 %v1134_v31, %v1094_v32 }
 0x2f8   : > { %v1136_v33 = vpop.f32.mrf.mxu0 }
 0x2f9   : > { %v1137_v35 = vadd.f32 %v1136_v33, %v1094_v32 }
 0x2fa   : > { %v1138_v36 = vpop.f32.mrf.mxu0 }
 0x2fb   : > { %v1143_v37 = vcombine.low %v1135_v34, %v1137_v35 }
 0x2fc   : > { %v1139_v38 = vpop.f32.mrf.mxu0 }
 0x2fd   : > { %1145 = vst [vmem:[%s373_s15] sm:$0xff] %v1143_v37 }
 0x2fe PF: > { %s20_s13 = sadd.s32 1, %s1412_s13  }
 0x2ff   : > { %p17_p4 = scmp.ge.s32.totalorder %s20_s13, 4  }
 0x301   :  { %19 = sbr.rel (!%p17_p4) target bundleno = 1 (0x1), region = 95 }

</bundles_post_ra>
